<compile_context>
chip_gen: v5e
topology: v5e:2x2
jax: 0.10.0
libtpu: 0.0.40
codegen_flags: <defaults>
</compile_context>

<pallas_src>
import math

import numpy as np
import jax
import jax.numpy as jnp
from jax.experimental import pallas as pl
from jax.experimental.pallas import tpu as pltpu


# ----------------------------- Pallas kernels ------------------------------

def _knn_dist_kernel(q_ref, pT_ref, bq_ref, bp_ref, d_ref):
    """Batch-masked pairwise squared distances: queries (tmq,3) vs points (3,tn)."""
    q = q_ref[...]                                              # (tmq, 3)
    pT = pT_ref[...]                                            # (3, tn)
    qq = jnp.sum(q * q, axis=1, keepdims=True)                  # (tmq, 1)
    pp = jnp.sum(pT * pT, axis=0, keepdims=True)                # (1, tn)
    cross = jnp.dot(q, pT, preferred_element_type=jnp.float32)  # (tmq, tn)  MXU
    d2 = qq + pp - 2.0 * cross
    # points from a different batch element -> +BIG so top-k never ranks them
    d_ref[...] = jnp.where(bq_ref[...] != bp_ref[...], jnp.float32(1e30), d2)


def _mish(h):
    # Mish(x) = x * tanh(softplus(x))
    return h * jnp.tanh(jnp.logaddexp(h, 0.0))


def _pointnet_conv_kernel(feat_ref, bias_ref, xdst_ref,
                          w1_ref, b1_ref, g_ref, beta_ref,
                          w2_ref, b2_ref, wl_ref, bl_ref,
                          out_ref):
    """Grid = (M//tm,)  [parallel].

    feat_ref : (tm*k, F)   message inputs [x_j, pos_j - pos_i], m-major over rows
    bias_ref : (tm*k, 1)   0 for valid neighbors, -1e30 for cross-batch padding
    xdst_ref : (tm, C_in)
    out_ref  : (tm, C_out) = max_j net(feat_j) + lin(x_dst)
    """
    bf = jnp.bfloat16

    f = feat_ref[...].astype(bf)                                           # (tm*k, F)
    # local_nn: Linear -> Mish -> LayerNorm -> Linear   (bf16 MXU, f32 accumulate)
    h = jnp.dot(f, w1_ref[...].astype(bf),
                preferred_element_type=jnp.float32) + b1_ref[...]
    h = _mish(h)
    mu = jnp.mean(h, axis=-1, keepdims=True)
    var = jnp.mean(jnp.square(h - mu), axis=-1, keepdims=True)
    h = (h - mu) * jax.lax.rsqrt(var + 1e-5) * g_ref[...] + beta_ref[...]
    msg = jnp.dot(h.astype(bf), w2_ref[...].astype(bf),
                  preferred_element_type=jnp.float32) + b2_ref[...]        # (tm*k, C)
    msg = msg + bias_ref[...]                    # mask padded cross-batch neighbors

    tm, c_out = out_ref.shape
    k = msg.shape[0] // tm
    agg = jnp.max(msg.reshape(tm, k, c_out), axis=1)   # PointNetConv max aggregation

    res = jnp.dot(xdst_ref[...].astype(bf), wl_ref[...].astype(bf),
                  preferred_element_type=jnp.float32) + bl_ref[...]
    out_ref[...] = (agg + res).astype(out_ref.dtype)


# ------------------------------ JAX wrappers --------------------------------

def _pick_tile(n, pref, align):
    """Largest tile <= pref that divides n and is a multiple of `align`,
    falling back to the full extent n (always legal as a BlockSpec dim)."""
    if n <= pref:
        return n
    t = (pref // align) * align
    while t >= align:
        if n % t == 0:
            return t
        t -= align
    return n


def pairwise_sq_dists(queries, pos, batch_q, batch):
    """Tiled Pallas kernel wrapper: (M, N) masked squared distances."""
    M = queries.shape[0]
    N = pos.shape[0]
    tmq = _pick_tile(M, 256, 8)
    tn = _pick_tile(N, 512, 128)
    pT = pos.T                                   # (3, N) glue transpose (tiny)
    bq = batch_q.astype(jnp.int32)[:, None]      # (M, 1)
    bp = batch.astype(jnp.int32)[None, :]        # (1, N)
    return pl.pallas_call(
        _knn_dist_kernel,
        out_shape=jax.ShapeDtypeStruct((M, N), jnp.float32),
        grid=(M // tmq, N // tn),
        in_specs=[
            pl.BlockSpec((tmq, 3), lambda i, j: (i, 0)),
            pl.BlockSpec((3, tn), lambda i, j: (0, j)),
            pl.BlockSpec((tmq, 1), lambda i, j: (i, 0)),
            pl.BlockSpec((1, tn), lambda i, j: (0, j)),
        ],
        out_specs=pl.BlockSpec((tmq, tn), lambda i, j: (i, j)),
        compiler_params=pltpu.CompilerParams(
            dimension_semantics=("parallel", "parallel"),
            vmem_limit_bytes=48 * 1024 * 1024),
    )(queries, pT, bq, bp)


def pointnet_conv_residual(feat_MkF, nbr_bias_Mk, x_dst, params):
    """Pallas kernel wrapper: max_j net(feat[:, j]) + Linear(x_dst)."""
    M, k, F = feat_MkF.shape
    C_in = x_dst.shape[1]
    C_out = params["w2"].shape[1]
    tm = _pick_tile(M, 128, 8)

    feat2d = feat_MkF.reshape(M * k, F)          # m-major flatten: free (contiguous)
    bias2d = nbr_bias_Mk.reshape(M * k, 1)

    return pl.pallas_call(
        _pointnet_conv_kernel,
        out_shape=jax.ShapeDtypeStruct((M, C_out), jnp.float32),
        grid=(M // tm,),
        in_specs=[
            pl.BlockSpec((tm * k, F), lambda i: (i, 0)),
            pl.BlockSpec((tm * k, 1), lambda i: (i, 0)),
            pl.BlockSpec((tm, C_in), lambda i: (i, 0)),
            pl.BlockSpec(params["w1"].shape, lambda i: (0, 0)),
            pl.BlockSpec(params["b1"].shape, lambda i: (0, 0)),
            pl.BlockSpec(params["ln_g"].shape, lambda i: (0, 0)),
            pl.BlockSpec(params["ln_b"].shape, lambda i: (0, 0)),
            pl.BlockSpec(params["w2"].shape, lambda i: (0, 0)),
            pl.BlockSpec(params["b2"].shape, lambda i: (0, 0)),
            pl.BlockSpec(params["wl"].shape, lambda i: (0, 0)),
            pl.BlockSpec(params["bl"].shape, lambda i: (0, 0)),
        ],
        out_specs=pl.BlockSpec((tm, C_out), lambda i: (i, 0)),
        compiler_params=pltpu.CompilerParams(
            dimension_semantics=("parallel",),      # shards across TCs on v7x
            vmem_limit_bytes=48 * 1024 * 1024),
    )(feat2d, bias2d, x_dst,
      params["w1"], params["b1"], params["ln_g"], params["ln_b"],
      params["w2"], params["b2"], params["wl"], params["bl"])


def fps_deterministic(pos, num_batches, pts_per_batch, ratio):
    """Farthest point sampling per batch element (contiguous, equal-size batches).

    torch_geometric.fps semantics with deterministic start (first point of each
    batch element).  Sequential data-dependent argmax -> plain JAX, vmapped
    over batch elements.
    """
    m = int(math.ceil(ratio * pts_per_batch))
    pos_b = pos.reshape(num_batches, pts_per_batch, 3)

    def one(p):
        def body(i, carry):
            sel, dmin = carry
            last = p[sel[i - 1]]
            d = jnp.sum(jnp.square(p - last), axis=-1)
            dmin = jnp.minimum(dmin, d)
            nxt = jnp.argmax(dmin).astype(jnp.int32)
            return sel.at[i].set(nxt), dmin

        sel0 = jnp.zeros((m,), jnp.int32)
        dmin0 = jnp.full((pts_per_batch,), jnp.inf, jnp.float32)
        sel, _ = jax.lax.fori_loop(1, m, body, (sel0, dmin0))
        return sel

    sel_b = jax.vmap(one)(pos_b)                                       # (B, m)
    offs = (jnp.arange(num_batches, dtype=jnp.int32) * pts_per_batch)[:, None]
    return (sel_b + offs).reshape(-1)


def sa_module_forward(x, pos, batch, params, *, ratio, k,
                      num_batches, pts_per_batch):
    """SAModule.forward: returns (features, pos[idx], batch[idx])."""
    # idx = fps(pos, batch, ratio)
    idx = fps_deterministic(pos, num_batches, pts_per_batch, ratio)       # (M,)
    pos_dst = pos[idx]
    batch_dst = batch[idx]
    x_dst = x[idx]

    # row, col = knn(pos, pos[idx], r, batch, batch[idx])
    d2 = pairwise_sq_dists(pos_dst, pos, batch_dst, batch)                # Pallas
    # TODO(synk): fuse a streaming per-N-tile top-k into the distance kernel so
    # the full (M, N) matrix never hits HBM; lax.top_k used on the kernel output.
    neg_d, nbr = jax.lax.top_k(-d2, k)                                    # (M, k)
    valid = neg_d > -jnp.float32(1e29)                  # cross-batch pads -> False
    nbr_bias = jnp.where(valid, 0.0, -1e30).astype(jnp.float32)           # (M, k)

    # TODO(synk): gather x/pos rows inside the conv kernel (scalar-prefetch nbr)
    # to avoid materializing the (M, k, F) message tensor in HBM.
    x_j = x[nbr]                                        # (M, k, C_in)
    rel = pos[nbr] - pos_dst[:, None, :]                # (M, k, 3)
    feat = jnp.concatenate([x_j, rel], axis=-1)         # (M, k, C_in + 3), m-major

    out = pointnet_conv_residual(feat, nbr_bias, x_dst, params)           # Pallas
    return out, pos_dst, batch_dst


# --------------------------------- driver -----------------------------------

if __name__ == "__main__":
    B = 2            # batch elements
    n_per = 16       # points per batch element
    N = B * n_per
    C_in = 4         # in_channels
    H = 32           # hidden width of `net`
    C_out = 16       # out_channels
    ratio = 0.5      # fps ratio  -> M = 16 sampled points
    k = 8            # `r` interpreted as number of knn neighbors

    key = jax.random.PRNGKey(0)
    kx, kp, k1, k2, k3 = jax.random.split(key, 5)
    x = jax.random.normal(kx, (N, C_in), jnp.float32)
    pos = jax.random.normal(kp, (N, 3), jnp.float32)
    batch = jnp.repeat(jnp.arange(B, dtype=jnp.int32), n_per)

    F = C_in + 3
    params = {
        "w1": jax.random.normal(k1, (F, H), jnp.float32) / np.sqrt(F),
        "b1": jnp.zeros((1, H), jnp.float32),
        "ln_g": jnp.ones((1, H), jnp.float32),
        "ln_b": jnp.zeros((1, H), jnp.float32),
        "w2": jax.random.normal(k2, (H, C_out), jnp.float32) / np.sqrt(H),
        "b2": jnp.zeros((1, C_out), jnp.float32),
        "wl": jax.random.normal(k3, (C_in, C_out), jnp.float32) / np.sqrt(C_in),
        "bl": jnp.zeros((1, C_out), jnp.float32),
    }

    out, pos_dst, batch_dst = sa_module_forward(
        x, pos, batch, params, ratio=ratio, k=k,
        num_batches=B, pts_per_batch=n_per)
    jax.block_until_ready((out, pos_dst, batch_dst))

    # ---- lightweight correctness check vs a plain-JAX reference ------------
    bf = jnp.bfloat16
    idx = fps_deterministic(pos, B, n_per, ratio)
    pos_d, x_d, batch_d = pos[idx], x[idx], batch[idx]

    d2_ker = pairwise_sq_dists(pos_d, pos, batch_d, batch)
    qq = jnp.sum(pos_d ** 2, 1, keepdims=True)
    pp = jnp.sum(pos ** 2, 1)[None, :]
    d2_ref = qq + pp - 2.0 * pos_d @ pos.T
    d2_ref = jnp.where(batch_d[:, None] != batch[None, :], 1e30, d2_ref)
    np.testing.assert_allclose(np.asarray(d2_ker), np.asarray(d2_ref),
                               rtol=1e-4, atol=1e-4)

    neg_d, nbr = jax.lax.top_k(-d2_ker, k)
    valid = neg_d > -jnp.float32(1e29)
    feat = jnp.concatenate([x[nbr], pos[nbr] - pos_d[:, None, :]], -1)    # (M,k,F)
    h = jnp.dot(feat.astype(bf), params["w1"].astype(bf),
                preferred_element_type=jnp.float32) + params["b1"]
    h = h * jnp.tanh(jnp.logaddexp(h, 0.0))
    mu = h.mean(-1, keepdims=True)
    var = ((h - mu) ** 2).mean(-1, keepdims=True)
    h = (h - mu) * jax.lax.rsqrt(var + 1e-5) * params["ln_g"] + params["ln_b"]
    msg = jnp.dot(h.astype(bf), params["w2"].astype(bf),
                  preferred_element_type=jnp.float32) + params["b2"]
    msg = msg + jnp.where(valid, 0.0, -1e30)[..., None]
    ref = msg.max(axis=1) + jnp.dot(x_d.astype(bf), params["wl"].astype(bf),
                                    preferred_element_type=jnp.float32) + params["bl"]
    np.testing.assert_allclose(np.asarray(out), np.asarray(ref),
                               rtol=2e-3, atol=2e-3)

    print("KERNEL_OK")
</pallas_src>

<mosaic_0001>
module attributes {stable_mosaic.version = 11 : i64} {
  func.func @_knn_dist_kernel(%arg0: i32, %arg1: i32, %arg2: memref<16x3xf32, #tpu.memory_space<vmem>>, %arg3: memref<3x32xf32, #tpu.memory_space<vmem>>, %arg4: memref<16x1xi32, #tpu.memory_space<vmem>>, %arg5: memref<1x32xi32, #tpu.memory_space<vmem>>, %arg6: memref<16x32xf32, #tpu.memory_space<vmem>>) attributes {dimension_semantics = [#tpu.dimension_semantics<parallel>, #tpu.dimension_semantics<parallel>], iteration_bounds = array<i64: 1, 1>, scalar_prefetch = 0 : i64, scratch_operands = 0 : i64, tpu.core_type = #tpu.core_type<tc>, window_params = [{transform_indices = @transform_0, window_bounds = array<i64: 16, 3>}, {transform_indices = @transform_1, window_bounds = array<i64: 3, 32>}, {transform_indices = @transform_2, window_bounds = array<i64: 16, 1>}, {transform_indices = @transform_3, window_bounds = array<i64: 1, 32>}, {transform_indices = @transform_4, window_bounds = array<i64: 16, 32>}]} {
    %c0 = arith.constant 0 : index
    %c0_0 = arith.constant 0 : index
    %0 = vector.load %arg2[%c0, %c0_0] : memref<16x3xf32, #tpu.memory_space<vmem>>, vector<16x3xf32>
    %c0_1 = arith.constant 0 : index
    %c0_2 = arith.constant 0 : index
    %1 = vector.load %arg3[%c0_1, %c0_2] : memref<3x32xf32, #tpu.memory_space<vmem>>, vector<3x32xf32>
    %2 = arith.mulf %0, %0 : vector<16x3xf32>
    %cst = arith.constant dense<0.000000e+00> : vector<16xf32>
    %3 = vector.multi_reduction <add>, %2, %cst [1] : vector<16x3xf32> to vector<16xf32>
    %4 = vector.shape_cast %3 : vector<16xf32> to vector<16x1xf32>
    %5 = arith.mulf %1, %1 : vector<3x32xf32>
    %cst_3 = arith.constant dense<0.000000e+00> : vector<32xf32>
    %6 = vector.multi_reduction <add>, %5, %cst_3 [0] : vector<3x32xf32> to vector<32xf32>
    %7 = vector.shape_cast %6 : vector<32xf32> to vector<1x32xf32>
    %cst_4 = arith.constant dense<0.000000e+00> : vector<16x32xf32>
    %8 = tpu.matmul %0, %1, %cst_4 {dimension_numbers = #tpu.dot_dimension_numbers<[1], [0], [0], [1], [0, 0, 1, 1], [], []>} : vector<16x3xf32>, vector<3x32xf32>, vector<16x32xf32> -> vector<16x32xf32>
    %9 = vector.broadcast %4 : vector<16x1xf32> to vector<16x32xf32>
    %10 = vector.broadcast %7 : vector<1x32xf32> to vector<16x32xf32>
    %11 = arith.addf %9, %10 : vector<16x32xf32>
    %cst_5 = arith.constant 2.000000e+00 : f32
    %12 = vector.broadcast %cst_5 : f32 to vector<16x32xf32>
    %13 = arith.mulf %12, %8 : vector<16x32xf32>
    %14 = arith.subf %11, %13 : vector<16x32xf32>
    %c0_6 = arith.constant 0 : index
    %c0_7 = arith.constant 0 : index
    %15 = vector.load %arg4[%c0_6, %c0_7] : memref<16x1xi32, #tpu.memory_space<vmem>>, vector<16x1xi32>
    %c0_8 = arith.constant 0 : index
    %c0_9 = arith.constant 0 : index
    %16 = vector.load %arg5[%c0_8, %c0_9] : memref<1x32xi32, #tpu.memory_space<vmem>>, vector<1x32xi32>
    %17 = vector.broadcast %15 : vector<16x1xi32> to vector<16x32xi32>
    %18 = vector.broadcast %16 : vector<1x32xi32> to vector<16x32xi32>
    %19 = arith.cmpi ne, %17, %18 : vector<16x32xi32>
    %cst_10 = arith.constant 1.000000e+30 : f32
    %20 = vector.broadcast %cst_10 : f32 to vector<16x32xf32>
    %21 = arith.select %19, %20, %14 : vector<16x32xi1>, vector<16x32xf32>
    %c0_11 = arith.constant 0 : index
    %c0_12 = arith.constant 0 : index
    %22 = vector.load %arg6[%c0_11, %c0_12] : memref<16x32xf32, #tpu.memory_space<vmem>>, vector<16x32xf32>
    tpu.vector_store %arg6[%c0_11, %c0_12], %21 {strides = array<i32>} : memref<16x32xf32, #tpu.memory_space<vmem>>, vector<16x32xf32>,
    return
  }
  func.func @transform_0(%arg0: i32, %arg1: i32) -> (i32, i32) {
    %c0_i32 = arith.constant 0 : i32
    %c0_i32_0 = arith.constant 0 : i32
    return %arg0, %c0_i32 : i32, i32
  }
  func.func @transform_1(%arg0: i32, %arg1: i32) -> (i32, i32) {
    %c0_i32 = arith.constant 0 : i32
    %c0_i32_0 = arith.constant 0 : i32
    return %c0_i32, %arg1 : i32, i32
  }
  func.func @transform_2(%arg0: i32, %arg1: i32) -> (i32, i32) {
    %c0_i32 = arith.constant 0 : i32
    %c0_i32_0 = arith.constant 0 : i32
    return %arg0, %c0_i32 : i32, i32
  }
  func.func @transform_3(%arg0: i32, %arg1: i32) -> (i32, i32) {
    %c0_i32 = arith.constant 0 : i32
    %c0_i32_0 = arith.constant 0 : i32
    return %c0_i32, %arg1 : i32, i32
  }
  func.func @transform_4(%arg0: i32, %arg1: i32) -> (i32, i32) {
    %c0_i32 = arith.constant 0 : i32
    return %arg0, %arg1 : i32, i32
  }
}

</mosaic_0001>

<bundles_post_ra>
// kernel: tpu_custom_call.1
= control target key start
LH: loop header
LB: loop body
LE: loop exit
PB: predicated region body
PF: predicated region fallthrough
CT: control target
= control target key end

     0   :  { %vm45_vm0 = vcmask 1042432   ;;  %v150_v2 = vmov 0   ;;  %vm23_vm1 = vcmask 23552   ;;  %s200_s0 = inlined_call_operand.vmem [shape: f32[16,3], index: 0, kind: input, shape index: {}]   ;;  %s201_s1 = inlined_call_operand.vmem [shape: f32[3,32], index: 1, kind: input, shape index: {}]   ;;  %s202_s2 = inlined_call_operand.vmem [shape: s32[16,1], index: 2, kind: input, shape index: {}]   ;;  %s203_s3 = inlined_call_operand.vmem [shape: s32[1,32], index: 3, kind: input, shape index: {}]   ;;  %s204_s4 = inlined_call_operand.hbm [shape: f32[16,32], index: 4, kind: output, shape index: {}]  }
   0x1   :  { %v20_v0 = vld [vmem:[%s201_s1] sm:$0x7]  ;;  %121 = vset.pattern.permute.xlu1 %v150_v2  ;;  %v19_v4 = vld [vmem:[%s200_s0 + $0x8] sm:$0xff] }
   0x2   :  { %v78_v1 = vld [vmem:[%s202_s2] sm:$0xff]  ;;  %113 = vmatpush.msk.msra.mxu0 %vm45_vm0, %v20_v0  ;;  %116 = vmatpush.msk.msra.mxu1 %vm45_vm0, %v20_v0 }
   0x3   :  { %v18_v3 = vld [vmem:[%s200_s0] sm:$0xff]  ;;  %82 = vperm.xlu1 %121, %v78_v1  }
   0x4   :  { %v21_v5 = vmul.f32 %v18_v3, %v18_v3 }
   0x5   :  { %9 = vsyncpa [#allocation3], 0  ;;  %114 = vmatmul.msk.f32.vlgmr.msra.gmra.mxu0 %vm23_vm1, %v18_v3  ;;  %115 = vmatmul.msk.f32.vlgmr.msra.gmra.mxu1 %vm23_vm1, %v19_v4  ;;  %v22_v7 = vmul.f32 %v19_v4, %v19_v4  ;;  %v79_v8 = vld [vmem:[%s202_s2 + $0x8] sm:$0xff]  ;;  %v30_v10 = vmul.f32 %v20_v0, %v20_v0  ;;  %vm31_vm2 = vcmask 256000   ;;  %v123_v20 = vld [vmem:[%s203_s3] ss:$0 sm:$0xff] }
   0x6   :  { %v24_v6 = vsel %vm23_vm1, %v21_v5, 0.0  ;;  %122 = vset.pattern.permute.xlu0 %v150_v2  ;;  %s151_s2 = smov [#allocation2]   ;;  %s101_s28 = sshll.u32 %s204_s4, 4  ;;  %vm92_vm3 = vcmask 261120   ;;  %s102_s28 = int_to_ptr.hbm [resolvable:$true] %s101_s28 }
   0x7   :  { %25 = vadd.xlane.f32.xlu0 %v24_v6  ;;  %v27_v9 = vsel %vm23_vm1, %v22_v7, 0.0  ;;  %v32_v11 = vsel %vm31_vm2, %v30_v10, 0.0  ;;  %s99_s25 = sshll.u32 %s151_s2, 4  ;;  %s152_s3 = smov 128   ;;  %s100_s25 = int_to_ptr.vmem [resolvable:$true] %s99_s25 }
   0x8   :  { %v33_v12 = vrot.slane %v32_v11, 4  ;;  %s153_s29 = smov 8  }
   0xa   :  { %v34_v13 = vadd.f32 %v33_v12, %v32_v11 }
   0xb   :  { %85 = vperm.xlu1 %121, %v79_v8  }
   0xc   :  { %v35_v14 = vrot.slane %v34_v13, 2 }
   0xe   :  { %v36_v15 = vadd.f32 %v35_v14, %v34_v13 }
   0xf   :  { %28 = vadd.xlane.f32.xlu0 %v27_v9 }
  0x10   :  { %v37_v18 = vrot.slane %v36_v15, 1 }
  0x12   :  { %v38_v19 = vadd.f32 %v37_v18, %v36_v15 }
  0x75   :  { %v83_v16 = vpop.permute.xlu1 %82 }
  0x76   :  { %vm88_vm4 = vcmp.ne.s32.totalorder %v83_v16, %v123_v20 }
  0x7a   :  { %v26_v17 = vpop.xlane.xlu0 %25 }
  0x7b   :  { %v72_v23 = vadd.f32 %v38_v19, %v26_v17 }
  0x7d   :  { %v86_v27 = vpop.permute.xlu1 %85 }
  0x7e   :  { %vm89_vm5 = vcmp.ne.s32.totalorder %v86_v27, %v123_v20 }
  0x82   :  { %v66_v21 = vpop.f32.mrf.mxu0  ;;  %v69_v22 = vpop.f32.mrf.mxu1 }
  0x83   :  { %v74_v24 = vmul.f32 2.0, %v66_v21  ;;  %v75_v25 = vmul.f32 2.0, %v69_v22  ;;  %v29_v26 = vpop.xlane.xlu0 %28 }
  0x84   :  { %v73_v28 = vadd.f32 %v38_v19, %v29_v26 }
  0x85   :  { %v76_v29 = vsub.f32 %v72_v23, %v74_v24 }
  0x86   :  { %v77_v30 = vsub.f32 %v73_v28, %v75_v25 }
  0x87   :  { %v90_v31 = vsel %vm88_vm4, 1e+30, %v76_v29 }
  0x88   :  { %93 = vst.msk [vmem:[#allocation2] sm:$0xff] %vm92_vm3, %v90_v31  ;;  %v91_v32 = vsel %vm89_vm5, 1e+30, %v77_v30 }
  0x89   :  { %94 = vst.msk [vmem:[#allocation2 + $0x8] sm:$0xff] %vm92_vm3, %v91_v32 }
  0x8a   :  { %107 = dma.vmem_to_hbm [thread:$0]  %s100_s25, 256, %s102_s28, [#allocation3], %s152_s3, %s152_s3, %s153_s29  }
  0x8b   :  { %148 = dma.done.wait [#allocation3], 256  }
  0x8c   :  { %149 = vsyncadd [#allocation3], 4294967040 }
  0x8d   :  { %112 = vsyncpa [#allocation3], 1 }

</bundles_post_ra>
